<compile_context>
chip_gen: v5e
topology: v5e:2x2
jax: 0.10.0
libtpu: 0.0.40
codegen_flags: <defaults>
</compile_context>

<pallas_src>
import functools

import jax
import jax.numpy as jnp
from jax.experimental import pallas as pl
from jax.experimental.pallas import tpu as pltpu


def _round_up(x, m):
    return ((x + m - 1) // m) * m


def _stable_log1p(z):
    # Accurate log1p(z) for z >= 0 (Kahan's trick) using only ops with known
    # Mosaic lowerings; matches torch's log1p-based BCE for |logit| >~ 17.
    u = 1.0 + z
    denom = jnp.where(u == 1.0, 1.0, u - 1.0)
    return jnp.where(u == 1.0, z, jnp.log(u) * (z / denom))


def _bce_with_logits(x, y):
    # numerically stable: max(x, 0) - x*y + log1p(exp(-|x|))
    return jnp.maximum(x, 0.0) - x * y + _stable_log1p(jnp.exp(-jnp.abs(x)))


def _cbm_loss_kernel(alpha, binary_target, scale,
                     c_rows, t_rows, c_tile, t_tile,
                     needs_mask, c_width, out_w,
                     cp_ref, ct_ref, tl_ref, tt_ref, out_ref, acc_c, acc_t):
    """Per-batch-tile BCE/CE accumulation + lane-dense finalize.

    Concept refs are (c_tile, c_width) folded blocks; target refs are
    (t_tile, K) / (t_tile, 1) row-major blocks.
    """
    pid = pl.program_id(0)
    last = pl.num_programs(0) - 1

    @pl.when(pid == 0)
    def _init():
        acc_c[...] = jnp.zeros_like(acc_c)
        acc_t[...] = jnp.zeros_like(acc_t)

    def make_batch_sum(tile_rows, real_rows):
        """(tile_rows, N) -> (1, N) axis-0 sum, masking host-padded rows."""
        if tile_rows >= 128:
            # Idle-MXU reduction: sum over rows == matmul with a (masked) ones row.
            if needs_mask:
                rid = (jax.lax.broadcasted_iota(jnp.int32, (1, tile_rows), 1)
                       + pid * tile_rows)
                w_row = (rid < real_rows).astype(jnp.float32)          # (1, tile_rows)
            else:
                w_row = jnp.ones((1, tile_rows), jnp.float32)
            return lambda x: jnp.dot(w_row, x, preferred_element_type=jnp.float32)
        if needs_mask:
            rid = (jax.lax.broadcasted_iota(jnp.int32, (tile_rows, 1), 0)
                   + pid * tile_rows)
            m_col = (rid < real_rows).astype(jnp.float32)              # (tile_rows, 1)
            return lambda x: jnp.sum(x * m_col, axis=0, keepdims=True)
        return lambda x: jnp.sum(x, axis=0, keepdims=True)

    c_sum = make_batch_sum(c_tile, c_rows)
    t_sum = make_batch_sum(t_tile, t_rows)

    # ---- per-concept BCE-with-logits (lane-dense folded layout) ----
    x = cp_ref[...].astype(jnp.float32)                                # (c_tile, CW)
    y = ct_ref[...].astype(jnp.float32)                                # (c_tile, CW)
    acc_c[...] += c_sum(_bce_with_logits(x, y))                        # (1, CW)

    # ---- target loss ----
    logits = tl_ref[...].astype(jnp.float32)                           # (t_tile, K) / (t_tile, 1)
    if binary_target:
        yt = tt_ref[...].astype(jnp.float32)                           # (t_tile, 1)
        per_row = _bce_with_logits(logits, yt)                         # (t_tile, 1)
    else:
        labels = tt_ref[...]                                           # (t_tile, 1) int32
        k = logits.shape[1]
        # TODO(synk): out-of-range labels give loss == lse (no error), unlike torch.
        onehot = (jax.lax.broadcasted_iota(jnp.int32, (t_tile, k), 1)
                  == labels).astype(jnp.float32)                       # (t_tile, K)
        m = jnp.max(logits, axis=-1, keepdims=True)                    # (t_tile, 1)
        lse = m + jnp.log(jnp.sum(jnp.exp(logits - m), axis=-1, keepdims=True))
        true_logit = jnp.sum(onehot * logits, axis=-1, keepdims=True)  # (t_tile, 1)
        per_row = lse - true_logit                                     # (t_tile, 1)
    acc_t[...] += t_sum(per_row)                                       # (1, 1)

    # ---- finalize: single lane-dense output write ----
    @pl.when(pid == last)
    def _finalize():
        c_loss = acc_c[...] * scale                                    # (1, CW)
        t_loss = acc_t[...] * scale                                    # (1, 1)
        summed = jnp.sum(c_loss, axis=1, keepdims=True)                # (1, 1) fold-invariant
        total = t_loss + alpha * summed                                # (1, 1)
        lane = jax.lax.broadcasted_iota(jnp.int32, (1, out_w), 1)
        out_ref[...] = (jnp.where(lane == c_width, t_loss, 0.0)
                        + jnp.where(lane == c_width + 1, summed, 0.0)
                        + jnp.where(lane == c_width + 2, total, 0.0))
        out_ref[:, :c_width] = c_loss                                  # folded per-concept sums


def cbm_loss(concepts_pred_logits, concepts_true, target_pred_logits, target_true,
             *, num_classes, training_mode="joint", reduction="mean", alpha=1.0,
             max_whole_batch=1024, batch_tile=512, max_fold_width=256):
    """JAX/Pallas equivalent of CBMLoss.forward.

    Returns (target_loss, per_concept_losses (array of shape (C,)),
             summed_concepts_loss, total_loss).
    """
    if reduction not in ("mean", "sum"):
        # TODO(synk): reduction='none' changes output shapes; not implemented.
        raise NotImplementedError(f"reduction={reduction!r} not supported; use 'mean' or 'sum'")

    alpha_eff = float(alpha) if training_mode == "joint" else 1.0
    B, C = concepts_pred_logits.shape
    binary_target = (num_classes == 2)

    # Mirror torch's `.float()` only when needed (bool/int concept labels) so
    # bf16/f32 activations are NOT re-written to HBM as f32 by the wrapper.
    if not jnp.issubdtype(concepts_true.dtype, jnp.floating):
        concepts_true = concepts_true.astype(jnp.float32)

    if target_pred_logits.ndim == 1:
        target_pred_logits = target_pred_logits.reshape(B, 1)
    K = target_pred_logits.shape[1]

    if binary_target:
        if K != 1:
            raise ValueError("binary target path (num_classes == 2) expects "
                             f"target_pred_logits of shape (B, 1); got (B, {K})")
        tt_in = target_true.reshape(B, 1)
        if not jnp.issubdtype(tt_in.dtype, jnp.floating):
            tt_in = tt_in.astype(jnp.float32)
    else:
        # int32 labels (B, 1); one-hot built in-kernel (no B*K f32 one-hot via HBM).
        tt_in = target_true.reshape(B, 1).astype(jnp.int32)

    tiled = B > max_whole_batch

    # ---- lane-dense concept folding ----
    # Fold `fold` consecutive batch rows into the lane dimension:
    #   (B, C) -> (B/fold, fold*C)   (row-major reshape, no data movement)
    # `fold` must divide B (exact reshape -> row masks stay row-granular) and,
    # when tiling, be small enough that a tile still has >= 8 sublanes.
    max_fold = max(1, max_fold_width // max(C, 1))
    if tiled:
        max_fold = min(max_fold, max(1, batch_tile // 8))
    fold = 1
    for f in range(min(max_fold, B), 0, -1):
        if B % f == 0:
            fold = f
            break
    CW = fold * C                       # folded concept width (lane dim)
    R = B // fold                       # folded row count
    cp_in = concepts_pred_logits.reshape(R, CW)
    ct_in = concepts_true.reshape(R, CW)
    tl_in = target_pred_logits
    # TODO(synk): the target path is left row-major (K lanes); folding it too
    # would need grouped lane reductions for the per-row log-softmax.

    # ---- batch tiling decision ----
    if not tiled:
        tile_rows, tile_b = R, B        # single grid step, whole-array blocks
        num_tiles, needs_mask = 1, False
    else:
        tile_rows = max(8, (batch_tile // fold) // 8 * 8)   # sublane-aligned
        tile_rows = min(tile_rows, _round_up(R, 8))
        tile_b = tile_rows * fold
        r_pad = _round_up(R, tile_rows)
        b_pad = r_pad * fold
        num_tiles = r_pad // tile_rows
        needs_mask = (r_pad != R)
        if needs_mask:
            cp_in = jnp.pad(cp_in, ((0, r_pad - R), (0, 0)))
            ct_in = jnp.pad(ct_in, ((0, r_pad - R), (0, 0)))
            tl_in = jnp.pad(tl_in, ((0, b_pad - B), (0, 0)))
            tt_in = jnp.pad(tt_in, ((0, b_pad - B), (0, 0)))

    scale = (1.0 / float(B)) if reduction == "mean" else 1.0
    out_w = _round_up(CW + 3, 128)      # lane-dense fused output

    kernel = functools.partial(
        _cbm_loss_kernel, alpha_eff, binary_target, scale,
        R, B, tile_rows, tile_b, needs_mask, CW, out_w)

    out = pl.pallas_call(
        kernel,
        out_shape=jax.ShapeDtypeStruct((1, out_w), jnp.float32),
        grid_spec=pltpu.PrefetchScalarGridSpec(
            num_scalar_prefetch=0,
            grid=(num_tiles,),
            in_specs=[
                pl.BlockSpec((tile_rows, CW), lambda i: (i, 0)),
                pl.BlockSpec((tile_rows, CW), lambda i: (i, 0)),
                pl.BlockSpec((tile_b, K), lambda i: (i, 0)),
                pl.BlockSpec((tile_b, 1), lambda i: (i, 0)),
            ],
            out_specs=pl.BlockSpec((1, out_w), lambda i: (0, 0)),
            scratch_shapes=[
                pltpu.VMEM((1, CW), jnp.float32),  # folded per-concept BCE sums
                pltpu.VMEM((1, 1), jnp.float32),   # target-loss sum accumulator
            ],
        ),
        compiler_params=pltpu.CompilerParams(
            dimension_semantics=("arbitrary",)),
    )(cp_in, ct_in, tl_in, tt_in)

    # Un-fold the per-concept sums (tiny (fold, C) reduce, outside the kernel).
    concepts_loss = out[0, :CW].reshape(fold, C).sum(axis=0)
    target_loss = out[0, CW]
    summed_concepts_loss = out[0, CW + 1]
    total_loss = out[0, CW + 2]
    return target_loss, concepts_loss, summed_concepts_loss, total_loss


# ----------------------------- pure-JAX references -----------------------------

def _ref_multiclass(cp, ct, tl, tt, alpha):
    bce = jnp.maximum(cp, 0.0) - cp * ct + jnp.log1p(jnp.exp(-jnp.abs(cp)))
    c_loss = jnp.mean(bce, axis=0)
    summed = jnp.sum(c_loss)
    logp = jax.nn.log_softmax(tl, axis=-1)
    t = -jnp.mean(jnp.take_along_axis(logp, tt[:, None].astype(jnp.int32), axis=-1))
    return t, c_loss, summed, t + alpha * summed


def _ref_binary(cp, ct, tl, tt, alpha):
    bce = jnp.maximum(cp, 0.0) - cp * ct + jnp.log1p(jnp.exp(-jnp.abs(cp)))
    c_loss = jnp.mean(bce, axis=0)
    summed = jnp.sum(c_loss)
    x = tl[:, 0]
    t = jnp.mean(jnp.maximum(x, 0.0) - x * tt + jnp.log1p(jnp.exp(-jnp.abs(x))))
    return t, c_loss, summed, t + alpha * summed


if __name__ == "__main__":
    key = jax.random.PRNGKey(0)
    k1, k2, k3, k4, k5, k6, k7, k8, k9, k10 = jax.random.split(key, 10)

    # ---- multi-class CE path (small, single-tile, fold=8 -> 32 lanes) ----
    B, C, K = 8, 4, 5
    cp = jax.random.normal(k1, (B, C), dtype=jnp.float32)
    ct = jax.random.bernoulli(k2, 0.5, (B, C)).astype(jnp.float32)
    tl = jax.random.normal(k3, (B, K), dtype=jnp.float32)
    tt = jax.random.randint(k4, (B,), 0, K, dtype=jnp.int32)

    t_loss, concepts_loss, summed, total = cbm_loss(
        cp, ct, tl, tt, num_classes=K, training_mode="joint", reduction="mean", alpha=1.0)
    jax.block_until_ready(total)
    rt, rc, rs, rtot = _ref_multiclass(cp, ct, tl, tt, 1.0)
    assert jnp.allclose(t_loss, rt, atol=1e-5), (t_loss, rt)
    assert jnp.allclose(concepts_loss, rc, atol=1e-5)
    assert jnp.allclose(summed, rs, atol=1e-5)
    assert jnp.allclose(total, rtot, atol=1e-5)

    # ---- binary BCE path (num_classes == 2, (B,1) logits, float labels) ----
    tl2 = jax.random.normal(k5, (B, 1), dtype=jnp.float32)
    tt2 = jax.random.bernoulli(k6, 0.5, (B,)).astype(jnp.float32)
    bt, bc, bs, btot = cbm_loss(
        cp, ct, tl2, tt2, num_classes=2, training_mode="sequential",
        reduction="mean", alpha=0.5)  # sequential -> alpha_eff == 1.0
    jax.block_until_ready(btot)
    rbt, rbc, rbs, rbtot = _ref_binary(cp, ct, tl2, tt2, 1.0)
    assert jnp.allclose(bt, rbt, atol=1e-5), (bt, rbt)
    assert jnp.allclose(bc, rbc, atol=1e-5)
    assert jnp.allclose(bs, rbs, atol=1e-5)
    assert jnp.allclose(btot, rbtot, atol=1e-5)

    # ---- tiled data shared by the next two cases ----
    B2 = 200
    cp2 = jax.random.normal(k7, (B2, C), dtype=jnp.float32)
    ct2 = jax.random.bernoulli(k8, 0.5, (B2, C)).astype(jnp.float32)
    tl3 = jax.random.normal(k9, (B2, K), dtype=jnp.float32)
    tt3 = jax.random.randint(k10, (B2,), 0, K, dtype=jnp.int32)
    rgt, rgc, rgs, rgtot = _ref_multiclass(cp2, ct2, tl3, tt3, 2.0)

    # ---- tiled path, folding disabled: ragged mask + MXU ones-row reduction ----
    gt, gc, gs, gtot = cbm_loss(
        cp2, ct2, tl3, tt3, num_classes=K, training_mode="joint",
        reduction="mean", alpha=2.0, max_whole_batch=64, batch_tile=128,
        max_fold_width=C)  # fold == 1 -> exercises the 128-row MXU reduction
    jax.block_until_ready(gtot)
    assert jnp.allclose(gt, rgt, atol=2e-5), (gt, rgt)
    assert jnp.allclose(gc, rgc, atol=2e-5)
    assert jnp.allclose(gs, rgs, atol=2e-5)
    assert jnp.allclose(gtot, rgtot, atol=2e-5)

    # ---- tiled path, lane-dense folding (fold=10 -> 40 lanes), ragged mask ----
    ft, fc, fs, ftot = cbm_loss(
        cp2, ct2, tl3, tt3, num_classes=K, training_mode="joint",
        reduction="mean", alpha=2.0, max_whole_batch=64, batch_tile=128)
    jax.block_until_ready(ftot)
    assert jnp.allclose(ft, rgt, atol=2e-5), (ft, rgt)
    assert jnp.allclose(fc, rgc, atol=2e-5)
    assert jnp.allclose(fs, rgs, atol=2e-5)
    assert jnp.allclose(ftot, rgtot, atol=2e-5)

    print("KERNEL_OK")
</pallas_src>

<mosaic_0001>
module attributes {stable_mosaic.version = 11 : i64} {
  func.func @_cbm_loss_kernel(%arg0: i32, %arg1: memref<1x32xf32, #tpu.memory_space<vmem>>, %arg2: memref<1x32xf32, #tpu.memory_space<vmem>>, %arg3: memref<8x5xf32, #tpu.memory_space<vmem>>, %arg4: memref<8x1xi32, #tpu.memory_space<vmem>>, %arg5: memref<1x128xf32, #tpu.memory_space<vmem>>, %arg6: memref<1x32xf32, #tpu.memory_space<vmem>>, %arg7: memref<1x1xf32, #tpu.memory_space<vmem>>) attributes {dimension_semantics = [#tpu.dimension_semantics<arbitrary>], iteration_bounds = array<i64: 1>, scalar_prefetch = 0 : i64, scratch_operands = 2 : i64, tpu.core_type = #tpu.core_type<tc>, window_params = [{transform_indices = @transform_0, window_bounds = array<i64: 1, 32>}, {transform_indices = @transform_1, window_bounds = array<i64: 1, 32>}, {transform_indices = @transform_2, window_bounds = array<i64: 8, 5>}, {transform_indices = @transform_3, window_bounds = array<i64: 8, 1>}, {pipeline_mode = #tpu.pipeline_mode<synchronous>, transform_indices = @transform_4, window_bounds = array<i64: 1, 128>}]} {
    %c0_i32 = arith.constant 0 : i32
    %0 = arith.cmpi eq, %arg0, %c0_i32 : i32
    %1 = arith.extui %0 : i1 to i32
    %c0_i32_0 = arith.constant 0 : i32
    %2 = arith.cmpi ne, %1, %c0_i32_0 : i32
    scf.if %2 {
      %cst_29 = arith.constant 0.000000e+00 : f32
      %61 = vector.broadcast %cst_29 : f32 to vector<1x32xf32>
      %c0_30 = arith.constant 0 : index
      %c0_31 = arith.constant 0 : index
      %62 = vector.load %arg6[%c0_30, %c0_31] : memref<1x32xf32, #tpu.memory_space<vmem>>, vector<1x32xf32>
      tpu.vector_store %arg6[%c0_30, %c0_31], %61 {strides = array<i32>} : memref<1x32xf32, #tpu.memory_space<vmem>>, vector<1x32xf32>,
      %cst_32 = arith.constant 0.000000e+00 : f32
      %63 = vector.broadcast %cst_32 : f32 to vector<1x1xf32>
      %c0_33 = arith.constant 0 : index
      %c0_34 = arith.constant 0 : index
      %64 = vector.load %arg7[%c0_33, %c0_34] : memref<1x1xf32, #tpu.memory_space<vmem>>, vector<1x1xf32>
      tpu.vector_store %arg7[%c0_33, %c0_34], %63 {strides = array<i32>} : memref<1x1xf32, #tpu.memory_space<vmem>>, vector<1x1xf32>,
    } else {
    }
    %c0 = arith.constant 0 : index
    %c0_1 = arith.constant 0 : index
    %3 = vector.load %arg1[%c0, %c0_1] : memref<1x32xf32, #tpu.memory_space<vmem>>, vector<1x32xf32>
    %c0_2 = arith.constant 0 : index
    %c0_3 = arith.constant 0 : index
    %4 = vector.load %arg2[%c0_2, %c0_3] : memref<1x32xf32, #tpu.memory_space<vmem>>, vector<1x32xf32>
    %c0_4 = arith.constant 0 : index
    %c0_5 = arith.constant 0 : index
    %5 = vector.load %arg6[%c0_4, %c0_5] : memref<1x32xf32, #tpu.memory_space<vmem>>, vector<1x32xf32>
    %cst = arith.constant 0.000000e+00 : f32
    %6 = vector.broadcast %cst : f32 to vector<1x32xf32>
    %7 = arith.maximumf %3, %6 : vector<1x32xf32>
    %8 = arith.mulf %3, %4 : vector<1x32xf32>
    %9 = arith.subf %7, %8 : vector<1x32xf32>
    %10 = math.absf %3 : vector<1x32xf32>
    %cst_6 = arith.constant 0.000000e+00 : f32
    %11 = vector.broadcast %cst_6 : f32 to vector<1x32xf32>
    %12 = arith.subf %11, %10 : vector<1x32xf32>
    %13 = math.exp %12 : vector<1x32xf32>
    %cst_7 = arith.constant 1.000000e+00 : f32
    %14 = vector.broadcast %cst_7 : f32 to vector<1x32xf32>
    %15 = arith.addf %14, %13 : vector<1x32xf32>
    %cst_8 = arith.constant 1.000000e+00 : f32
    %16 = vector.broadcast %cst_8 : f32 to vector<1x32xf32>
    %17 = arith.cmpf oeq, %15, %16 : vector<1x32xf32>
    %cst_9 = arith.constant 1.000000e+00 : f32
    %18 = vector.broadcast %cst_9 : f32 to vector<1x32xf32>
    %19 = arith.subf %15, %18 : vector<1x32xf32>
    %cst_10 = arith.constant 1.000000e+00 : f32
    %20 = vector.broadcast %cst_10 : f32 to vector<1x32xf32>
    %21 = arith.select %17, %20, %19 : vector<1x32xi1>, vector<1x32xf32>
    %cst_11 = arith.constant 1.000000e+00 : f32
    %22 = vector.broadcast %cst_11 : f32 to vector<1x32xf32>
    %23 = arith.cmpf oeq, %15, %22 : vector<1x32xf32>
    %24 = math.log %15 : vector<1x32xf32>
    %25 = arith.divf %13, %21 : vector<1x32xf32>
    %26 = arith.mulf %24, %25 : vector<1x32xf32>
    %27 = arith.select %23, %13, %26 : vector<1x32xi1>, vector<1x32xf32>
    %28 = arith.addf %9, %27 : vector<1x32xf32>
    %cst_12 = arith.constant dense<0.000000e+00> : vector<32xf32>
    %29 = vector.multi_reduction <add>, %28, %cst_12 [0] : vector<1x32xf32> to vector<32xf32>
    %30 = vector.shape_cast %29 : vector<32xf32> to vector<1x32xf32>
    %31 = arith.addf %5, %30 : vector<1x32xf32>
    %c0_13 = arith.constant 0 : index
    %c0_14 = arith.constant 0 : index
    %32 = vector.load %arg6[%c0_13, %c0_14] : memref<1x32xf32, #tpu.memory_space<vmem>>, vector<1x32xf32>
    tpu.vector_store %arg6[%c0_13, %c0_14], %31 {strides = array<i32>} : memref<1x32xf32, #tpu.memory_space<vmem>>, vector<1x32xf32>,
    %c0_15 = arith.constant 0 : index
    %c0_16 = arith.constant 0 : index
    %33 = vector.load %arg3[%c0_15, %c0_16] : memref<8x5xf32, #tpu.memory_space<vmem>>, vector<8x5xf32>
    %c0_17 = arith.constant 0 : index
    %c0_18 = arith.constant 0 : index
    %34 = vector.load %arg4[%c0_17, %c0_18] : memref<8x1xi32, #tpu.memory_space<vmem>>, vector<8x1xi32>
    %35 = tpu.iota {dimensions = array<i32: 1>} : vector<8x5xi32>
    %36 = vector.broadcast %34 : vector<8x1xi32> to vector<8x5xi32>
    %37 = arith.cmpi eq, %35, %36 : vector<8x5xi32>
    %38 = arith.extui %37 : vector<8x5xi1> to vector<8x5xi32>
    %39 = arith.sitofp %38 : vector<8x5xi32> to vector<8x5xf32>
    %cst_19 = arith.constant dense<0xFF800000> : vector<8xf32>
    %40 = vector.multi_reduction <maximumf>, %33, %cst_19 [1] : vector<8x5xf32> to vector<8xf32>
    %41 = vector.shape_cast %40 : vector<8xf32> to vector<8x1xf32>
    %42 = vector.broadcast %41 : vector<8x1xf32> to vector<8x5xf32>
    %43 = arith.subf %33, %42 : vector<8x5xf32>
    %44 = math.exp %43 : vector<8x5xf32>
    %cst_20 = arith.constant dense<0.000000e+00> : vector<8xf32>
    %45 = vector.multi_reduction <add>, %44, %cst_20 [1] : vector<8x5xf32> to vector<8xf32>
    %46 = vector.shape_cast %45 : vector<8xf32> to vector<8x1xf32>
    %47 = math.log %46 : vector<8x1xf32>
    %48 = arith.addf %41, %47 : vector<8x1xf32>
    %49 = arith.mulf %39, %33 : vector<8x5xf32>
    %cst_21 = arith.constant dense<0.000000e+00> : vector<8xf32>
    %50 = vector.multi_reduction <add>, %49, %cst_21 [1] : vector<8x5xf32> to vector<8xf32>
    %51 = vector.shape_cast %50 : vector<8xf32> to vector<8x1xf32>
    %52 = arith.subf %48, %51 : vector<8x1xf32>
    %c0_22 = arith.constant 0 : index
    %c0_23 = arith.constant 0 : index
    %53 = vector.load %arg7[%c0_22, %c0_23] : memref<1x1xf32, #tpu.memory_space<vmem>>, vector<1x1xf32>
    %cst_24 = arith.constant dense<0.000000e+00> : vector<1xf32>
    %54 = vector.multi_reduction <add>, %52, %cst_24 [0] : vector<8x1xf32> to vector<1xf32>
    %55 = vector.shape_cast %54 : vector<1xf32> to vector<1x1xf32>
    %56 = arith.addf %53, %55 : vector<1x1xf32>
    %c0_25 = arith.constant 0 : index
    %c0_26 = arith.constant 0 : index
    %57 = vector.load %arg7[%c0_25, %c0_26] : memref<1x1xf32, #tpu.memory_space<vmem>>, vector<1x1xf32>
    tpu.vector_store %arg7[%c0_25, %c0_26], %56 {strides = array<i32>} : memref<1x1xf32, #tpu.memory_space<vmem>>, vector<1x1xf32>,
    %c0_i32_27 = arith.constant 0 : i32
    %58 = arith.cmpi eq, %arg0, %c0_i32_27 : i32
    %59 = arith.extui %58 : i1 to i32
    %c0_i32_28 = arith.constant 0 : i32
    %60 = arith.cmpi ne, %59, %c0_i32_28 : i32
    scf.if %60 {
      %c0_29 = arith.constant 0 : index
      %c0_30 = arith.constant 0 : index
      %61 = vector.load %arg6[%c0_29, %c0_30] : memref<1x32xf32, #tpu.memory_space<vmem>>, vector<1x32xf32>
      %cst_31 = arith.constant 1.250000e-01 : f32
      %62 = vector.broadcast %cst_31 : f32 to vector<1x32xf32>
      %63 = arith.mulf %61, %62 : vector<1x32xf32>
      %c0_32 = arith.constant 0 : index
      %c0_33 = arith.constant 0 : index
      %64 = vector.load %arg7[%c0_32, %c0_33] : memref<1x1xf32, #tpu.memory_space<vmem>>, vector<1x1xf32>
      %cst_34 = arith.constant 1.250000e-01 : f32
      %65 = vector.broadcast %cst_34 : f32 to vector<1x1xf32>
      %66 = arith.mulf %64, %65 : vector<1x1xf32>
      %cst_35 = arith.constant dense<0.000000e+00> : vector<1xf32>
      %67 = vector.multi_reduction <add>, %63, %cst_35 [1] : vector<1x32xf32> to vector<1xf32>
      %68 = vector.shape_cast %67 : vector<1xf32> to vector<1x1xf32>
      %cst_36 = arith.constant 1.000000e+00 : f32
      %69 = vector.broadcast %cst_36 : f32 to vector<1x1xf32>
      %70 = arith.mulf %69, %68 : vector<1x1xf32>
      %71 = arith.addf %66, %70 : vector<1x1xf32>
      %72 = tpu.iota {dimensions = array<i32: 1>} : vector<1x128xi32>
      %c32_i32 = arith.constant 32 : i32
      %73 = vector.broadcast %c32_i32 : i32 to vector<1x128xi32>
      %74 = arith.cmpi eq, %72, %73 : vector<1x128xi32>
      %cst_37 = arith.constant 0.000000e+00 : f32
      %75 = vector.shape_cast %66 : vector<1x1xf32> to vector<1x1xf32>
      %76 = vector.broadcast %75 : vector<1x1xf32> to vector<1x128xf32>
      %77 = vector.broadcast %cst_37 : f32 to vector<1x128xf32>
      %78 = arith.select %74, %76, %77 : vector<1x128xi1>, vector<1x128xf32>
      %c33_i32 = arith.constant 33 : i32
      %79 = vector.broadcast %c33_i32 : i32 to vector<1x128xi32>
      %80 = arith.cmpi eq, %72, %79 : vector<1x128xi32>
      %cst_38 = arith.constant 0.000000e+00 : f32
      %81 = vector.shape_cast %68 : vector<1x1xf32> to vector<1x1xf32>
      %82 = vector.broadcast %81 : vector<1x1xf32> to vector<1x128xf32>
      %83 = vector.broadcast %cst_38 : f32 to vector<1x128xf32>
      %84 = arith.select %80, %82, %83 : vector<1x128xi1>, vector<1x128xf32>
      %85 = arith.addf %78, %84 : vector<1x128xf32>
      %c34_i32 = arith.constant 34 : i32
      %86 = vector.broadcast %c34_i32 : i32 to vector<1x128xi32>
      %87 = arith.cmpi eq, %72, %86 : vector<1x128xi32>
      %cst_39 = arith.constant 0.000000e+00 : f32
      %88 = vector.shape_cast %71 : vector<1x1xf32> to vector<1x1xf32>
      %89 = vector.broadcast %88 : vector<1x1xf32> to vector<1x128xf32>
      %90 = vector.broadcast %cst_39 : f32 to vector<1x128xf32>
      %91 = arith.select %87, %89, %90 : vector<1x128xi1>, vector<1x128xf32>
      %92 = arith.addf %85, %91 : vector<1x128xf32>
      %c0_40 = arith.constant 0 : index
      %c0_41 = arith.constant 0 : index
      %93 = vector.load %arg5[%c0_40, %c0_41] : memref<1x128xf32, #tpu.memory_space<vmem>>, vector<1x128xf32>
      tpu.vector_store %arg5[%c0_40, %c0_41], %92 {strides = array<i32>} : memref<1x128xf32, #tpu.memory_space<vmem>>, vector<1x128xf32>,
      %c0_42 = arith.constant 0 : index
      %c0_43 = arith.constant 0 : index
      %94 = vector.load %arg5[%c0_42, %c0_43] : memref<1x128xf32, #tpu.memory_space<vmem>>, vector<1x32xf32>
      tpu.vector_store %arg5[%c0_42, %c0_43], %63 {strides = array<i32>} : memref<1x128xf32, #tpu.memory_space<vmem>>, vector<1x32xf32>,
    } else {
    }
    return
  }
  func.func @transform_0(%arg0: i32) -> (i32, i32) {
    %c0_i32 = arith.constant 0 : i32
    %c0_i32_0 = arith.constant 0 : i32
    return %arg0, %c0_i32 : i32, i32
  }
  func.func @transform_1(%arg0: i32) -> (i32, i32) {
    %c0_i32 = arith.constant 0 : i32
    %c0_i32_0 = arith.constant 0 : i32
    return %arg0, %c0_i32 : i32, i32
  }
  func.func @transform_2(%arg0: i32) -> (i32, i32) {
    %c0_i32 = arith.constant 0 : i32
    %c0_i32_0 = arith.constant 0 : i32
    return %arg0, %c0_i32 : i32, i32
  }
  func.func @transform_3(%arg0: i32) -> (i32, i32) {
    %c0_i32 = arith.constant 0 : i32
    %c0_i32_0 = arith.constant 0 : i32
    return %arg0, %c0_i32 : i32, i32
  }
  func.func @transform_4(%arg0: i32) -> (i32, i32) {
    %c0_i32 = arith.constant 0 : i32
    %c0_i32_0 = arith.constant 0 : i32
    %c0_i32_1 = arith.constant 0 : i32
    return %c0_i32, %c0_i32_0 : i32, i32
  }
}

</mosaic_0001>

<bundles_post_ra>
// kernel: tpu_custom_call.1
= control target key start
LH: loop header
LB: loop body
LE: loop exit
PB: predicated region body
PF: predicated region fallthrough
CT: control target
= control target key end

     0   :  { %9 = vsyncpa [#allocation5], 0  ;;  %s297_s0 = inlined_call_operand.vmem [shape: f32[1,32], index: 0, kind: input, shape index: {}]   ;;  %s298_s1 = inlined_call_operand.hbm [shape: f32[1,32], index: 1, kind: input, shape index: {}]   ;;  %s299_s2 = inlined_call_operand.vmem [shape: f32[8,5], index: 2, kind: input, shape index: {}]   ;;  %s300_s3 = inlined_call_operand.vmem [shape: s32[8,1], index: 3, kind: input, shape index: {}]   ;;  %s301_s4 = inlined_call_operand.hbm [shape: f32[1,128], index: 4, kind: output, shape index: {}]  }
   0x1   :  { %10 = vsyncpa [#allocation6], 0  ;;  %s18_s17 = sshll.u32 %s298_s1, 4  ;;  %s237_s18 = smov [#allocation4]   ;;  %s19_s17 = int_to_ptr.hbm [resolvable:$true] %s18_s17 }
   0x2   :  { %s20_s19 = sshll.u32 %s237_s18, 4  ;;  %s21_s19 = int_to_ptr.vmem [resolvable:$true] %s20_s19 }
   0x3   :  { %23 = dma.hbm_to_vmem [thread:$0]  %s19_s17, 16, %s21_s19, [#allocation5]  }
   0x4   :  { %233 = dma.done.wait [#allocation5], 16  }
   0x5   :  { %234 = vsyncadd [#allocation5], 4294967280  ;;  %v238_v0 = vmov 0   ;;  %vm88_vm0 = vcmask 39936   ;;  %v272_v1 = vld [vmem:[%s299_s2] sm:$0xff]  ;;  %vm38_vm2 = vcmask 0   ;;  %v80_v40 = vlaneseq }
   0x6   :  { %172 = vset.pattern.permute.xlu0 %v238_v0  ;;  %173 = vset.pattern.permute.xlu2 %v238_v0  ;;  %v89_v2 = vsel %vm88_vm0, %v272_v1, -inf  ;;  %v79_v3 = vld [vmem:[%s300_s3] sm:$0xff]  ;;  %v239_v12 = vmov 0.0   ;;  %vm36_vm3 = vcmask 253952   ;;  %s156_s26 = sshll.u32 %s301_s4, 4  ;;  %s157_s26 = int_to_ptr.hbm [resolvable:$true] %s156_s26 }
   0x7   :  { %174 = vset.pattern.permute.xlu1 %v238_v0  ;;  %90 = vmax.xlane.f32.xlu0 %v89_v2  ;;  %v40_v4 = vld [vmem:[%s297_s0] sm:$0x1]  ;;  %39 = vst.msk [vmem:[#allocation3] sm:$0x1] %vm38_vm2, %v239_v12  ;;  %v41_v16 = vld [vmem:[#allocation4] sm:$0x1] }
   0x8   :  { %v46_v5 = vand.u32 2147483647, %v40_v4  ;;  %37 = vst.msk [vmem:[#allocation2] sm:$0x1] %vm36_vm3, %v239_v12  ;;  %v43_v21 = vmax.f32 %v40_v4, 0.0  ;;  %v44_v22 = vmul.f32 %v41_v16, %v40_v4  ;;  %v81_v42 = vand.u32 127, %v80_v40 }
   0x9   :  { %s240_s0 = smov [#allocation7]  }
   0xa   :  { %v47_v6 = vsub.f32 0.0, %v46_v5  ;;  %v45_v30 = vsub.f32 %v43_v21, %v44_v22  ;;  %vm127_vm9 = vcmp.eq.s32.totalorder %v81_v42, 32  ;;  %vm135_vm10 = vcmp.eq.s32.totalorder %v81_v42, 33  ;;  %s154_s2 = sshll.u32 %s240_s0, 4  ;;  %s155_s2 = int_to_ptr.vmem [resolvable:$true] %s154_s2 }
   0xb   :  { %vm138_vm11 = vcmp.eq.s32.totalorder %v81_v42, 34 }
   0xc   :  { %v48_v7 = vmul.f32 1.442695, %v47_v6 }
   0xe   :  { %175 = vpow2.f32 %v48_v7  ;;  %v106_v60 = vld [vmem:[#allocation3] sm:$0x1] }
   0xf   :  { %v42_v34 = vld [vmem:[#allocation2] sm:$0x1] }
  0x14   :  { %v176_v8 = vpop.eup %175 }
  0x15   :  { %v50_v9 = vadd.f32 1.0, %v176_v8 }
  0x17   :  { %v166_v10 = vadd.f32 -1.0, %v50_v9  ;;  %vm51_vm1 = vcmp.eq.f32.partialorder %v50_v9, 1.0 }
  0x19   :  { %v53_v11 = vsel %vm51_vm1, 1.0, %v166_v10 }
  0x1a   :  { %177 = vrcp.f32 %v53_v11  ;;  %vm61_vm4 = vweird.f32 %v53_v11  ;;  %v65_v18 = vand.u32 2147483647, %v53_v11  ;;  %v67_v19 = vand.u32 2147483648, %v53_v11 }
  0x1b   :  { %83 = vperm.xlu0 %172, %v79_v3   ;;  %179 = vlog2.f32 %v50_v9 }
  0x1c   :  { %vm66_vm7 = vcmp.eq.f32.partialorder %v65_v18, 8.507059e+37  ;;  %v68_v23 = vor.u32 1.1754944e-38, %v67_v19 }
  0x20   :  { %v178_v13 = vpop.eup %177 }
  0x21   :  { %v57_v14 = vmul.f32 %v178_v13, %v53_v11  ;;  %vm62_vm5 = vweird.f32 %v178_v13  ;;  %v180_v25 = vpop.eup %179 }
  0x22   :  { %vm63_vm6 = vmor %vm61_vm4, %vm62_vm5  ;;  %v55_v27 = vmul.f32 0.6931472, %v180_v25 }
  0x23   :  { %v58_v15 = vsub.f32 1.0, %v57_v14 }
  0x25   :  { %v59_v17 = vmul.f32 %v178_v13, %v58_v15 }
  0x27   :  { %v60_v20 = vadd.f32 %v178_v13, %v59_v17 }
  0x29   :  { %v64_v24 = vsel %vm63_vm6, %v178_v13, %v60_v20 }
  0x2a   :  { %v69_v26 = vsel %vm66_vm7, %v68_v23, %v64_v24 }
  0x2b   :  { %v70_v28 = vmul.f32 %v176_v8, %v69_v26 }
  0x2d   :  { %v71_v32 = vmul.f32 %v70_v28, %v55_v27 }
  0x2f   :  { %v72_v35 = vsel %vm51_vm1, %v176_v8, %v71_v32 }
  0x30   :  { %v73_v36 = vadd.f32 %v72_v35, %v45_v30 }
  0x32   :  { %v75_v37 = vadd.f32 %v73_v36, %v42_v34 }
  0x34   :  { %77 = vst.msk [vmem:[#allocation2] sm:$0x1] %vm36_vm3, %v75_v37 }
  0x3b   :  { %v119_v41 = vld [vmem:[#allocation2] sm:$0x1] }
  0x3c   :  { %v120_v43 = vmul.f32 0.125, %v119_v41 }
  0x3e   :  { %v123_v44 = vsel %vm36_vm3, %v120_v43, 0.0 }
  0x3f   :  { %124 = vadd.xlane.f32.xlu2 %v123_v44 }
  0x7a   :  { %v91_v29 = vpop.xlane.xlu0 %90 }
  0x7b   :  { %v92_v31 = vsub.f32 %v272_v1, %v91_v29 }
  0x7d   :  { %v93_v33 = vmul.f32 1.442695, %v92_v31 }
  0x7f   :  { %181 = vpow2.f32 %v93_v33 }
  0x85   :  { %v182_v38 = vpop.eup %181 }
  0x86   :  { %v95_v39 = vsel %vm88_vm0, %v182_v38, 0.0 }
  0x87   :  { %96 = vadd.xlane.f32.xlu1 %v95_v39 }
  0x8d   :  { %v84_v45 = vpop.permute.xlu0 %83 }
  0x8e   :  { %vm85_vm8 = vcmp.eq.s32.totalorder %v81_v42, %v84_v45 }
  0x8f   :  { %v167_v46 = vsel %vm85_vm8, 1.0, %v239_v12 }
  0x90   :  { %v101_v47 = vmul.f32 %v167_v46, %v272_v1 }
  0x92   :  { %v102_v48 = vsel %vm88_vm0, %v101_v47, 0.0 }
  0x93   :  { %103 = vadd.xlane.f32.xlu1 %v102_v48 }
  0xb2   :  { %v125_v0 = vpop.xlane.xlu2 %124 }
  0xb3   :  { %v136_v7 = vsel %vm135_vm10, %v125_v0, 0.0 }
  0xfa   :  { %v97_v49 = vpop.xlane.xlu1 %96 }
  0xfb   :  { %183 = vlog2.f32 %v97_v49 }
 0x101   :  { %v184_v50 = vpop.eup %183 }
 0x102   :  { %v99_v51 = vmul.f32 0.6931472, %v184_v50 }
 0x104   :  { %v100_v52 = vadd.f32 %v99_v51, %v91_v29 }
 0x106   :  { %v104_v53 = vpop.xlane.xlu1 %103 }
 0x107   :  { %v105_v54 = vsub.f32 %v100_v52, %v104_v53 }
 0x109   :  { %v107_v55 = vrot.slane %v105_v54, 4 }
 0x10b   :  { %v108_v56 = vadd.f32 %v107_v55, %v105_v54 }
 0x10d   :  { %v109_v57 = vrot.slane %v108_v56, 2 }
 0x10f   :  { %v110_v58 = vadd.f32 %v109_v57, %v108_v56 }
 0x111   :  { %v111_v59 = vrot.slane %v110_v58, 1 }
 0x113   :  { %v112_v61 = vadd.f32 %v111_v59, %v110_v58 }
 0x115   :  { %v113_v62 = vadd.f32 %v112_v61, %v106_v60 }
 0x117   :  { %115 = vst.msk [vmem:[#allocation3] sm:$0x1] %vm38_vm2, %v113_v62 }
 0x11e   :  { %v121_v63 = vld [vmem:[#allocation3] sm:$0x1] }
 0x11f   :  { %v122_v1 = vmul.f32 0.125, %v121_v63 }
 0x121   :  { %v126_v2 = vadd.f32 %v125_v0, %v122_v1  ;;  %130 = vperm.xlu2 %173, %v122_v1  }
 0x123   :  { %141 = vperm.xlu1 %174, %v126_v2  }
 0x17b   :  { %v131_v3 = vpop.permute.xlu2 %130 }
 0x17c   :  { %v133_v4 = vperm.slane %v131_v3, 0 }
 0x17e   :  { %v134_v5 = vsel %vm127_vm9, %v133_v4, 0.0 }
 0x17f   :  { %v137_v9 = vadd.f32 %v136_v7, %v134_v5 }
 0x195   :  { %v142_v6 = vpop.permute.xlu1 %141 }
 0x196   :  { %v144_v8 = vperm.slane %v142_v6, 0 }
 0x198   :  { %v145_v10 = vsel %vm138_vm11, %v144_v8, 0.0 }
 0x199   :  { %v146_v11 = vadd.f32 %v145_v10, %v137_v9 }
 0x19b   :  { %147 = vst [vmem:[#allocation7] sm:$0x1] %v146_v11 }
 0x19c   :  { %148 = vst.msk [vmem:[#allocation7] sm:$0x1] %vm36_vm3, %v120_v43 }
 0x19d   :  { %159 = dma.vmem_to_hbm [thread:$0]  %s155_s2, 16, %s157_s26, [#allocation6]  }
 0x19e   :  { %235 = dma.done.wait [#allocation6], 16  }
 0x19f   :  { %236 = vsyncadd [#allocation6], 4294967280 }
 0x1a0   :  { %164 = vsyncpa [#allocation5], 1 }
 0x1a1   :  { %165 = vsyncpa [#allocation6], 1 }

</bundles_post_ra>
